<compile_context>
chip_gen: v5e
topology: v5e:2x2
jax: 0.10.0
libtpu: 0.0.40
codegen_flags: <defaults>
</compile_context>

<pallas_src>
import functools

import jax
import jax.numpy as jnp
from jax.experimental import pallas as pl
from jax.experimental.pallas import tpu as pltpu

LANES = 128


def _prediction_kernel(char_ref, mental_ref, state_ref,   # [Bb,cd] [Bb,md] [Bb,sd]
                       w_ref, b_ref,                       # [rows,128] bf16, [8,128] f32
                       out_ref,                            # [S, Bb, 128] f32 (time-major)
                       *, seq_len, hidden_dim, output_dim,
                       char_dim, mental_dim, state_dim):
    H, S = hidden_dim, seq_len
    cd, md, sd = char_dim, mental_dim, state_dim
    D_in = cd + md + sd
    Bb = char_ref.shape[0]
    f32, bf16 = jnp.float32, jnp.bfloat16

    # --- unpack the two packed parameter slabs (static slices, hoisted once).
    W = w_ref[...]                                   # [rows, 128] bf16
    Bv = b_ref[...]                                  # [8, 128]   f32
    W1 = W[0:D_in, 0:H]                              # [D_in, H]
    W2 = W[D_in:D_in + H, 0:H]                       # [H, H]
    WIH = W[D_in + H:D_in + 2 * H, 0:4 * H]          # [H, 4H]
    WHH = W[D_in + 2 * H:D_in + 3 * H, 0:4 * H]      # [H, 4H]
    W3 = W[D_in + 3 * H:D_in + 4 * H, :]             # [H, 128] zero past O -> lane-dense out
    b1 = Bv[0:1, 0:H]
    b2 = Bv[1:2, 0:H]
    bl = Bv[2:3, 0:4 * H]
    b3 = Bv[3:4, :]

    dot = functools.partial(jnp.dot, preferred_element_type=f32)

    # --- fc1 + relu: in-kernel "concat" as three partial dots over row-blocks
    # of W1 (no HBM concat, no lane shuffles on the inputs).
    h1 = (dot(char_ref[...].astype(bf16), W1[0:cd, :])
          + dot(mental_ref[...].astype(bf16), W1[cd:cd + md, :])
          + dot(state_ref[...].astype(bf16), W1[cd + md:cd + md + sd, :])
          + b1)
    h1 = jnp.maximum(h1, 0.0)

    # --- fc2 + relu
    h2 = jnp.maximum(dot(h1.astype(bf16), W2) + b2, 0.0)

    # --- LSTM over S steps.  Input is h2 at every step (.expand semantics),
    # so the input projection + bias is hoisted out of the loop.
    x_proj = dot(h2.astype(bf16), WIH) + bl          # [Bb, 4H] f32

    # Single-tanh gate nonlinearity: sigmoid(x) = 0.5*(tanh(x/2)+1).
    # Pre-scale the sigmoid lanes (i,f,o) by 0.5, one full-width tanh, then a
    # VPU fma fixup.  Masks hoisted out of the loop.
    lane = jax.lax.broadcasted_iota(jnp.int32, (Bb, 4 * H), 1)
    is_g = (lane >= 2 * H) & (lane < 3 * H)
    pre_scale = jnp.where(is_g, 1.0, 0.5).astype(f32)   # also the post-mult
    post_shift = jnp.where(is_g, 0.0, 0.5).astype(f32)

    h = jnp.zeros((Bb, H), f32)
    c = jnp.zeros((Bb, H), f32)
    hs = []
    # TODO(synk): if the bundle dump shows the [H,4H] RHS being re-pushed into
    # the MXU each step (v6e), drive it via pltpu.matmul_push_rhs/_acc_lhs and
    # keep it resident; on v7x the MRB can also fold the x_proj add into the
    # matmul accumulator.
    for _ in range(S):
        gates = x_proj + dot(h.astype(bf16), WHH)        # [Bb, 4H] f32
        y = jnp.tanh(gates * pre_scale)                  # one EUP pass
        act = y * pre_scale + post_shift                 # sigmoid/tanh per lane
        i_g = act[:, 0 * H:1 * H]
        f_g = act[:, 1 * H:2 * H]
        g_g = act[:, 2 * H:3 * H]
        o_g = act[:, 3 * H:4 * H]
        c = f_g * c + i_g * g_g
        h = o_g * jnp.tanh(c)
        hs.append(h)

    # --- fc3: stack the S hidden states in vregs (no VMEM scratch round-trip),
    # ONE (S*Bb,H)@(H,128) matmul, ONE lane-dense (unmasked) store.
    hs_all = jnp.concatenate(hs, axis=0)                 # [S*Bb, H] f32
    out = dot(hs_all.astype(bf16), W3) + b3              # [S*Bb, 128] f32
    out_ref[...] = out.reshape(S, Bb, LANES)


def pack_params(params, char_dim, mental_dim, state_dim, hidden_dim, output_dim):
    """Pack the 12 parameter arrays into one bf16 weight slab + one f32 bias slab."""
    (w1, b1, w2, b2, wih, whh, bl, w3, b3) = params
    H, O = hidden_dim, output_dim
    D_in = char_dim + mental_dim + state_dim
    assert 4 * H <= LANES, "packing assumes 4*hidden_dim <= 128 lanes"
    rows = D_in + 4 * H
    rows_pad = ((rows + 7) // 8) * 8
    w_slab = jnp.zeros((rows_pad, LANES), jnp.float32)
    r = 0
    w_slab = w_slab.at[r:r + D_in, :H].set(w1); r += D_in
    w_slab = w_slab.at[r:r + H, :H].set(w2); r += H
    w_slab = w_slab.at[r:r + H, :4 * H].set(wih); r += H
    w_slab = w_slab.at[r:r + H, :4 * H].set(whh); r += H
    w_slab = w_slab.at[r:r + H, :O].set(w3); r += H
    w_slab = w_slab.astype(jnp.bfloat16)          # bf16 MXU operands, half the DMA bytes
    b_slab = jnp.zeros((8, LANES), jnp.float32)
    b_slab = b_slab.at[0, :H].set(b1[0])
    b_slab = b_slab.at[1, :H].set(b2[0])
    b_slab = b_slab.at[2, :4 * H].set(bl[0])
    b_slab = b_slab.at[3, :O].set(b3[0])
    return w_slab, b_slab


def prediction_network_forward(character, mental_state, current_state,
                               w_slab, b_slab, *, seq_len, hidden_dim,
                               output_dim, batch_block=16):
    B, cd = character.shape
    md = mental_state.shape[1]
    sd = current_state.shape[1]
    H, O, S = hidden_dim, output_dim, seq_len
    assert 4 * H <= LANES
    assert batch_block % 8 == 0, "batch block must stay 8-sublane aligned"
    assert B % batch_block == 0, "pad the batch to a multiple of batch_block"
    Bb = batch_block
    nblk = B // Bb

    kernel = functools.partial(
        _prediction_kernel, seq_len=S, hidden_dim=H, output_dim=O,
        char_dim=cd, mental_dim=md, state_dim=sd)

    out3 = pl.pallas_call(
        kernel,
        out_shape=jax.ShapeDtypeStruct((S, B, LANES), jnp.float32),
        grid=(nblk,),
        in_specs=[
            pl.BlockSpec((Bb, cd), lambda i: (i, 0)),
            pl.BlockSpec((Bb, md), lambda i: (i, 0)),
            pl.BlockSpec((Bb, sd), lambda i: (i, 0)),
            # Constant block index -> weights/biases stay VMEM-resident across
            # the whole batch grid (fetched once).
            pl.BlockSpec(w_slab.shape, lambda i: (0, 0)),
            pl.BlockSpec(b_slab.shape, lambda i: (0, 0)),
        ],
        out_specs=pl.BlockSpec((S, Bb, LANES), lambda i: (0, i, 0)),
        compiler_params=pltpu.CompilerParams(
            dimension_semantics=("parallel",)),   # v7x: shard blocks across 2 TCs
    )(character, mental_state, current_state, w_slab, b_slab)

    # TODO(synk): consumers that accept time-major [S, B, O] can skip this
    # XLA-side slice+transpose entirely.
    return jnp.transpose(out3[:, :, :O], (1, 0, 2))


def init_params(key, char_dim, mental_dim, state_dim, hidden_dim, output_dim):
    """Deterministic synthetic parameters matching the PyTorch module shapes.

    Weights are stored transposed ([in, out]) for right-multiplication; LSTM
    gate order is PyTorch's (i, f, g, o); b_ih + b_hh are folded into one bias.
    """
    D_in = char_dim + mental_dim + state_dim
    H, O = hidden_dim, output_dim
    ks = jax.random.split(key, 10)
    scale = 0.1
    w1 = scale * jax.random.normal(ks[0], (D_in, H), jnp.float32)
    b1 = scale * jax.random.normal(ks[1], (1, H), jnp.float32)
    w2 = scale * jax.random.normal(ks[2], (H, H), jnp.float32)
    b2 = scale * jax.random.normal(ks[3], (1, H), jnp.float32)
    wih = scale * jax.random.normal(ks[4], (H, 4 * H), jnp.float32)
    whh = scale * jax.random.normal(ks[5], (H, 4 * H), jnp.float32)
    b_ih = scale * jax.random.normal(ks[6], (1, 4 * H), jnp.float32)
    b_hh = scale * jax.random.normal(ks[7], (1, 4 * H), jnp.float32)
    bl = b_ih + b_hh
    w3 = scale * jax.random.normal(ks[8], (H, O), jnp.float32)
    b3 = scale * jax.random.normal(ks[9], (1, O), jnp.float32)
    return (w1, b1, w2, b2, wih, whh, bl, w3, b3)


def reference_forward(character, mental_state, current_state, params,
                      seq_len, hidden_dim):
    """Pure-JAX reference mirroring the PyTorch forward (bf16 matmul operands
    to match the kernel's MXU precision)."""
    (w1, b1, w2, b2, wih, whh, bl, w3, b3) = params
    bf16 = jnp.bfloat16
    dot = lambda a, b: jnp.dot(a.astype(bf16), b.astype(bf16),
                               preferred_element_type=jnp.float32)
    x = jnp.concatenate([character, mental_state, current_state], axis=1)
    x = jax.nn.relu(dot(x, w1) + b1)
    x = jax.nn.relu(dot(x, w2) + b2)
    B = x.shape[0]
    H = hidden_dim
    h = jnp.zeros((B, H), jnp.float32)
    c = jnp.zeros((B, H), jnp.float32)
    outs = []
    for _ in range(seq_len):
        gates = dot(x, wih) + dot(h, whh) + bl
        i = jax.nn.sigmoid(gates[:, 0 * H:1 * H])
        f = jax.nn.sigmoid(gates[:, 1 * H:2 * H])
        g = jnp.tanh(gates[:, 2 * H:3 * H])
        o = jax.nn.sigmoid(gates[:, 3 * H:4 * H])
        c = f * c + i * g
        h = o * jnp.tanh(c)
        outs.append(dot(h, w3) + b3)
    return jnp.stack(outs, axis=1)


if __name__ == "__main__":
    # Small shapes consistent with the module's forward; batch chosen to
    # exercise the batch grid (4 blocks of 16 rows).
    B = 64
    char_dim, mental_dim, state_dim = 8, 8, 16
    hidden_dim, output_dim, seq_len = 32, 8, 5

    key = jax.random.PRNGKey(0)
    k_c, k_m, k_s, k_p = jax.random.split(key, 4)
    character = jax.random.normal(k_c, (B, char_dim), jnp.float32)
    mental_state = jax.random.normal(k_m, (B, mental_dim), jnp.float32)
    current_state = jax.random.normal(k_s, (B, state_dim), jnp.float32)

    params = init_params(k_p, char_dim, mental_dim, state_dim,
                         hidden_dim, output_dim)
    w_slab, b_slab = pack_params(params, char_dim, mental_dim, state_dim,
                                 hidden_dim, output_dim)

    out = prediction_network_forward(
        character, mental_state, current_state, w_slab, b_slab,
        seq_len=seq_len, hidden_dim=hidden_dim, output_dim=output_dim,
        batch_block=16)
    out = jax.block_until_ready(out)

    ref = reference_forward(character, mental_state, current_state, params,
                            seq_len, hidden_dim)
    assert out.shape == (B, seq_len, output_dim)
    assert jnp.allclose(out, ref, atol=2e-3, rtol=2e-3), "mismatch vs reference"

    print("KERNEL_OK")
</pallas_src>

<mosaic_0001>
module attributes {stable_mosaic.version = 11 : i64} {
  func.func @_prediction_kernel(%arg0: i32, %arg1: memref<16x8xf32, #tpu.memory_space<vmem>>, %arg2: memref<16x8xf32, #tpu.memory_space<vmem>>, %arg3: memref<16x16xf32, #tpu.memory_space<vmem>>, %arg4: memref<160x128xbf16, #tpu.memory_space<vmem>>, %arg5: memref<8x128xf32, #tpu.memory_space<vmem>>, %arg6: memref<5x16x128xf32, #tpu.memory_space<vmem>>) attributes {dimension_semantics = [#tpu.dimension_semantics<parallel>], iteration_bounds = array<i64: 4>, scalar_prefetch = 0 : i64, scratch_operands = 0 : i64, tpu.core_type = #tpu.core_type<tc>, window_params = [{transform_indices = @transform_0, window_bounds = array<i64: 16, 8>}, {transform_indices = @transform_1, window_bounds = array<i64: 16, 8>}, {transform_indices = @transform_2, window_bounds = array<i64: 16, 16>}, {pipeline_mode = #tpu.pipeline_mode<synchronous>, transform_indices = @transform_3, window_bounds = array<i64: 160, 128>}, {pipeline_mode = #tpu.pipeline_mode<synchronous>, transform_indices = @transform_4, window_bounds = array<i64: 8, 128>}, {transform_indices = @transform_5, window_bounds = array<i64: 5, 16, 128>}]} {
    %c0 = arith.constant 0 : index
    %c0_0 = arith.constant 0 : index
    %0 = vector.load %arg4[%c0, %c0_0] : memref<160x128xbf16, #tpu.memory_space<vmem>>, vector<160x128xbf16>
    %c0_1 = arith.constant 0 : index
    %c0_2 = arith.constant 0 : index
    %1 = vector.load %arg5[%c0_1, %c0_2] : memref<8x128xf32, #tpu.memory_space<vmem>>, vector<8x128xf32>
    %2 = vector.extract_strided_slice %0 {offsets = [0, 0], sizes = [32, 32], strides = [1, 1]} : vector<160x128xbf16> to vector<32x32xbf16>
    %3 = vector.extract_strided_slice %0 {offsets = [32, 0], sizes = [32, 32], strides = [1, 1]} : vector<160x128xbf16> to vector<32x32xbf16>
    %4 = vector.extract_strided_slice %0 {offsets = [64, 0], sizes = [32, 128], strides = [1, 1]} : vector<160x128xbf16> to vector<32x128xbf16>
    %5 = vector.extract_strided_slice %0 {offsets = [96, 0], sizes = [32, 128], strides = [1, 1]} : vector<160x128xbf16> to vector<32x128xbf16>
    %6 = vector.extract_strided_slice %0 {offsets = [128, 0], sizes = [32, 128], strides = [1, 1]} : vector<160x128xbf16> to vector<32x128xbf16>
    %7 = vector.extract_strided_slice %1 {offsets = [0, 0], sizes = [1, 32], strides = [1, 1]} : vector<8x128xf32> to vector<1x32xf32>
    %8 = vector.extract_strided_slice %1 {offsets = [1, 0], sizes = [1, 32], strides = [1, 1]} : vector<8x128xf32> to vector<1x32xf32>
    %9 = vector.extract_strided_slice %1 {offsets = [2, 0], sizes = [1, 128], strides = [1, 1]} : vector<8x128xf32> to vector<1x128xf32>
    %10 = vector.extract_strided_slice %1 {offsets = [3, 0], sizes = [1, 128], strides = [1, 1]} : vector<8x128xf32> to vector<1x128xf32>
    %c0_3 = arith.constant 0 : index
    %c0_4 = arith.constant 0 : index
    %11 = vector.load %arg1[%c0_3, %c0_4] : memref<16x8xf32, #tpu.memory_space<vmem>>, vector<16x8xf32>
    %12 = arith.truncf %11 : vector<16x8xf32> to vector<16x8xbf16>
    %13 = vector.extract_strided_slice %2 {offsets = [0, 0], sizes = [8, 32], strides = [1, 1]} : vector<32x32xbf16> to vector<8x32xbf16>
    %cst = arith.constant dense<0.000000e+00> : vector<16x32xf32>
    %14 = tpu.matmul %12, %13, %cst {dimension_numbers = #tpu.dot_dimension_numbers<[1], [0], [0], [1], [0, 0, 1, 1], [], []>} : vector<16x8xbf16>, vector<8x32xbf16>, vector<16x32xf32> -> vector<16x32xf32>
    %c0_5 = arith.constant 0 : index
    %c0_6 = arith.constant 0 : index
    %15 = vector.load %arg2[%c0_5, %c0_6] : memref<16x8xf32, #tpu.memory_space<vmem>>, vector<16x8xf32>
    %16 = arith.truncf %15 : vector<16x8xf32> to vector<16x8xbf16>
    %17 = vector.extract_strided_slice %2 {offsets = [8, 0], sizes = [8, 32], strides = [1, 1]} : vector<32x32xbf16> to vector<8x32xbf16>
    %cst_7 = arith.constant dense<0.000000e+00> : vector<16x32xf32>
    %18 = tpu.matmul %16, %17, %cst_7 {dimension_numbers = #tpu.dot_dimension_numbers<[1], [0], [0], [1], [0, 0, 1, 1], [], []>} : vector<16x8xbf16>, vector<8x32xbf16>, vector<16x32xf32> -> vector<16x32xf32>
    %19 = arith.addf %14, %18 : vector<16x32xf32>
    %c0_8 = arith.constant 0 : index
    %c0_9 = arith.constant 0 : index
    %20 = vector.load %arg3[%c0_8, %c0_9] : memref<16x16xf32, #tpu.memory_space<vmem>>, vector<16x16xf32>
    %21 = arith.truncf %20 : vector<16x16xf32> to vector<16x16xbf16>
    %22 = vector.extract_strided_slice %2 {offsets = [16, 0], sizes = [16, 32], strides = [1, 1]} : vector<32x32xbf16> to vector<16x32xbf16>
    %cst_10 = arith.constant dense<0.000000e+00> : vector<16x32xf32>
    %23 = tpu.matmul %21, %22, %cst_10 {dimension_numbers = #tpu.dot_dimension_numbers<[1], [0], [0], [1], [0, 0, 1, 1], [], []>} : vector<16x16xbf16>, vector<16x32xbf16>, vector<16x32xf32> -> vector<16x32xf32>
    %24 = arith.addf %19, %23 : vector<16x32xf32>
    %25 = vector.broadcast %7 : vector<1x32xf32> to vector<16x32xf32>
    %26 = arith.addf %24, %25 : vector<16x32xf32>
    %cst_11 = arith.constant 0.000000e+00 : f32
    %27 = vector.broadcast %cst_11 : f32 to vector<16x32xf32>
    %28 = arith.maximumf %26, %27 : vector<16x32xf32>
    %29 = arith.truncf %28 : vector<16x32xf32> to vector<16x32xbf16>
    %cst_12 = arith.constant dense<0.000000e+00> : vector<16x32xf32>
    %30 = tpu.matmul %29, %3, %cst_12 {dimension_numbers = #tpu.dot_dimension_numbers<[1], [0], [0], [1], [0, 0, 1, 1], [], []>} : vector<16x32xbf16>, vector<32x32xbf16>, vector<16x32xf32> -> vector<16x32xf32>
    %31 = vector.broadcast %8 : vector<1x32xf32> to vector<16x32xf32>
    %32 = arith.addf %30, %31 : vector<16x32xf32>
    %cst_13 = arith.constant 0.000000e+00 : f32
    %33 = vector.broadcast %cst_13 : f32 to vector<16x32xf32>
    %34 = arith.maximumf %32, %33 : vector<16x32xf32>
    %35 = arith.truncf %34 : vector<16x32xf32> to vector<16x32xbf16>
    %cst_14 = arith.constant dense<0.000000e+00> : vector<16x128xf32>
    %36 = tpu.matmul %35, %4, %cst_14 {dimension_numbers = #tpu.dot_dimension_numbers<[1], [0], [0], [1], [0, 0, 1, 1], [], []>} : vector<16x32xbf16>, vector<32x128xbf16>, vector<16x128xf32> -> vector<16x128xf32>
    %37 = vector.broadcast %9 : vector<1x128xf32> to vector<16x128xf32>
    %38 = arith.addf %36, %37 : vector<16x128xf32>
    %39 = tpu.iota {dimensions = array<i32: 1>} : vector<16x128xi32>
    %c64_i32 = arith.constant 64 : i32
    %40 = vector.broadcast %c64_i32 : i32 to vector<16x128xi32>
    %41 = arith.cmpi sge, %39, %40 : vector<16x128xi32>
    %c96_i32 = arith.constant 96 : i32
    %42 = vector.broadcast %c96_i32 : i32 to vector<16x128xi32>
    %43 = arith.cmpi slt, %39, %42 : vector<16x128xi32>
    %44 = arith.andi %41, %43 : vector<16x128xi1>
    %cst_15 = arith.constant 1.000000e+00 : f32
    %cst_16 = arith.constant 5.000000e-01 : f32
    %45 = vector.broadcast %cst_15 : f32 to vector<16x128xf32>
    %46 = vector.broadcast %cst_16 : f32 to vector<16x128xf32>
    %47 = arith.select %44, %45, %46 : vector<16x128xi1>, vector<16x128xf32>
    %cst_17 = arith.constant 0.000000e+00 : f32
    %cst_18 = arith.constant 5.000000e-01 : f32
    %48 = vector.broadcast %cst_17 : f32 to vector<16x128xf32>
    %49 = vector.broadcast %cst_18 : f32 to vector<16x128xf32>
    %50 = arith.select %44, %48, %49 : vector<16x128xi1>, vector<16x128xf32>
    %cst_19 = arith.constant 0.000000e+00 : f32
    %51 = vector.broadcast %cst_19 : f32 to vector<16x32xf32>
    %cst_20 = arith.constant 0.000000e+00 : f32
    %52 = vector.broadcast %cst_20 : f32 to vector<16x32xf32>
    %53 = arith.truncf %51 : vector<16x32xf32> to vector<16x32xbf16>
    %cst_21 = arith.constant dense<0.000000e+00> : vector<16x128xf32>
    %54 = tpu.matmul %53, %5, %cst_21 {dimension_numbers = #tpu.dot_dimension_numbers<[1], [0], [0], [1], [0, 0, 1, 1], [], []>} : vector<16x32xbf16>, vector<32x128xbf16>, vector<16x128xf32> -> vector<16x128xf32>
    %55 = arith.addf %38, %54 : vector<16x128xf32>
    %56 = arith.mulf %55, %47 : vector<16x128xf32>
    %57 = math.tanh %56 : vector<16x128xf32>
    %58 = arith.mulf %57, %47 : vector<16x128xf32>
    %59 = arith.addf %58, %50 : vector<16x128xf32>
    %60 = vector.extract_strided_slice %59 {offsets = [0, 0], sizes = [16, 32], strides = [1, 1]} : vector<16x128xf32> to vector<16x32xf32>
    %61 = vector.extract_strided_slice %59 {offsets = [0, 32], sizes = [16, 32], strides = [1, 1]} : vector<16x128xf32> to vector<16x32xf32>
    %62 = vector.extract_strided_slice %59 {offsets = [0, 64], sizes = [16, 32], strides = [1, 1]} : vector<16x128xf32> to vector<16x32xf32>
    %63 = vector.extract_strided_slice %59 {offsets = [0, 96], sizes = [16, 32], strides = [1, 1]} : vector<16x128xf32> to vector<16x32xf32>
    %64 = arith.mulf %61, %52 : vector<16x32xf32>
    %65 = arith.mulf %60, %62 : vector<16x32xf32>
    %66 = arith.addf %64, %65 : vector<16x32xf32>
    %67 = math.tanh %66 : vector<16x32xf32>
    %68 = arith.mulf %63, %67 : vector<16x32xf32>
    %69 = arith.truncf %68 : vector<16x32xf32> to vector<16x32xbf16>
    %cst_22 = arith.constant dense<0.000000e+00> : vector<16x128xf32>
    %70 = tpu.matmul %69, %5, %cst_22 {dimension_numbers = #tpu.dot_dimension_numbers<[1], [0], [0], [1], [0, 0, 1, 1], [], []>} : vector<16x32xbf16>, vector<32x128xbf16>, vector<16x128xf32> -> vector<16x128xf32>
    %71 = arith.addf %38, %70 : vector<16x128xf32>
    %72 = arith.mulf %71, %47 : vector<16x128xf32>
    %73 = math.tanh %72 : vector<16x128xf32>
    %74 = arith.mulf %73, %47 : vector<16x128xf32>
    %75 = arith.addf %74, %50 : vector<16x128xf32>
    %76 = vector.extract_strided_slice %75 {offsets = [0, 0], sizes = [16, 32], strides = [1, 1]} : vector<16x128xf32> to vector<16x32xf32>
    %77 = vector.extract_strided_slice %75 {offsets = [0, 32], sizes = [16, 32], strides = [1, 1]} : vector<16x128xf32> to vector<16x32xf32>
    %78 = vector.extract_strided_slice %75 {offsets = [0, 64], sizes = [16, 32], strides = [1, 1]} : vector<16x128xf32> to vector<16x32xf32>
    %79 = vector.extract_strided_slice %75 {offsets = [0, 96], sizes = [16, 32], strides = [1, 1]} : vector<16x128xf32> to vector<16x32xf32>
    %80 = arith.mulf %77, %66 : vector<16x32xf32>
    %81 = arith.mulf %76, %78 : vector<16x32xf32>
    %82 = arith.addf %80, %81 : vector<16x32xf32>
    %83 = math.tanh %82 : vector<16x32xf32>
    %84 = arith.mulf %79, %83 : vector<16x32xf32>
    %85 = arith.truncf %84 : vector<16x32xf32> to vector<16x32xbf16>
    %cst_23 = arith.constant dense<0.000000e+00> : vector<16x128xf32>
    %86 = tpu.matmul %85, %5, %cst_23 {dimension_numbers = #tpu.dot_dimension_numbers<[1], [0], [0], [1], [0, 0, 1, 1], [], []>} : vector<16x32xbf16>, vector<32x128xbf16>, vector<16x128xf32> -> vector<16x128xf32>
    %87 = arith.addf %38, %86 : vector<16x128xf32>
    %88 = arith.mulf %87, %47 : vector<16x128xf32>
    %89 = math.tanh %88 : vector<16x128xf32>
    %90 = arith.mulf %89, %47 : vector<16x128xf32>
    %91 = arith.addf %90, %50 : vector<16x128xf32>
    %92 = vector.extract_strided_slice %91 {offsets = [0, 0], sizes = [16, 32], strides = [1, 1]} : vector<16x128xf32> to vector<16x32xf32>
    %93 = vector.extract_strided_slice %91 {offsets = [0, 32], sizes = [16, 32], strides = [1, 1]} : vector<16x128xf32> to vector<16x32xf32>
    %94 = vector.extract_strided_slice %91 {offsets = [0, 64], sizes = [16, 32], strides = [1, 1]} : vector<16x128xf32> to vector<16x32xf32>
    %95 = vector.extract_strided_slice %91 {offsets = [0, 96], sizes = [16, 32], strides = [1, 1]} : vector<16x128xf32> to vector<16x32xf32>
    %96 = arith.mulf %93, %82 : vector<16x32xf32>
    %97 = arith.mulf %92, %94 : vector<16x32xf32>
    %98 = arith.addf %96, %97 : vector<16x32xf32>
    %99 = math.tanh %98 : vector<16x32xf32>
    %100 = arith.mulf %95, %99 : vector<16x32xf32>
    %101 = arith.truncf %100 : vector<16x32xf32> to vector<16x32xbf16>
    %cst_24 = arith.constant dense<0.000000e+00> : vector<16x128xf32>
    %102 = tpu.matmul %101, %5, %cst_24 {dimension_numbers = #tpu.dot_dimension_numbers<[1], [0], [0], [1], [0, 0, 1, 1], [], []>} : vector<16x32xbf16>, vector<32x128xbf16>, vector<16x128xf32> -> vector<16x128xf32>
    %103 = arith.addf %38, %102 : vector<16x128xf32>
    %104 = arith.mulf %103, %47 : vector<16x128xf32>
    %105 = math.tanh %104 : vector<16x128xf32>
    %106 = arith.mulf %105, %47 : vector<16x128xf32>
    %107 = arith.addf %106, %50 : vector<16x128xf32>
    %108 = vector.extract_strided_slice %107 {offsets = [0, 0], sizes = [16, 32], strides = [1, 1]} : vector<16x128xf32> to vector<16x32xf32>
    %109 = vector.extract_strided_slice %107 {offsets = [0, 32], sizes = [16, 32], strides = [1, 1]} : vector<16x128xf32> to vector<16x32xf32>
    %110 = vector.extract_strided_slice %107 {offsets = [0, 64], sizes = [16, 32], strides = [1, 1]} : vector<16x128xf32> to vector<16x32xf32>
    %111 = vector.extract_strided_slice %107 {offsets = [0, 96], sizes = [16, 32], strides = [1, 1]} : vector<16x128xf32> to vector<16x32xf32>
    %112 = arith.mulf %109, %98 : vector<16x32xf32>
    %113 = arith.mulf %108, %110 : vector<16x32xf32>
    %114 = arith.addf %112, %113 : vector<16x32xf32>
    %115 = math.tanh %114 : vector<16x32xf32>
    %116 = arith.mulf %111, %115 : vector<16x32xf32>
    %117 = arith.truncf %116 : vector<16x32xf32> to vector<16x32xbf16>
    %cst_25 = arith.constant dense<0.000000e+00> : vector<16x128xf32>
    %118 = tpu.matmul %117, %5, %cst_25 {dimension_numbers = #tpu.dot_dimension_numbers<[1], [0], [0], [1], [0, 0, 1, 1], [], []>} : vector<16x32xbf16>, vector<32x128xbf16>, vector<16x128xf32> -> vector<16x128xf32>
    %119 = arith.addf %38, %118 : vector<16x128xf32>
    %120 = arith.mulf %119, %47 : vector<16x128xf32>
    %121 = math.tanh %120 : vector<16x128xf32>
    %122 = arith.mulf %121, %47 : vector<16x128xf32>
    %123 = arith.addf %122, %50 : vector<16x128xf32>
    %124 = vector.extract_strided_slice %123 {offsets = [0, 0], sizes = [16, 32], strides = [1, 1]} : vector<16x128xf32> to vector<16x32xf32>
    %125 = vector.extract_strided_slice %123 {offsets = [0, 32], sizes = [16, 32], strides = [1, 1]} : vector<16x128xf32> to vector<16x32xf32>
    %126 = vector.extract_strided_slice %123 {offsets = [0, 64], sizes = [16, 32], strides = [1, 1]} : vector<16x128xf32> to vector<16x32xf32>
    %127 = vector.extract_strided_slice %123 {offsets = [0, 96], sizes = [16, 32], strides = [1, 1]} : vector<16x128xf32> to vector<16x32xf32>
    %128 = arith.mulf %125, %114 : vector<16x32xf32>
    %129 = arith.mulf %124, %126 : vector<16x32xf32>
    %130 = arith.addf %128, %129 : vector<16x32xf32>
    %131 = math.tanh %130 : vector<16x32xf32>
    %132 = arith.mulf %127, %131 : vector<16x32xf32>
    %133 = tpu.concatenate %68, %84, %100, %116, %132 in 0 : vector<16x32xf32>, vector<16x32xf32>, vector<16x32xf32>, vector<16x32xf32>, vector<16x32xf32> -> vector<80x32xf32>
    %134 = arith.truncf %133 : vector<80x32xf32> to vector<80x32xbf16>
    %cst_26 = arith.constant dense<0.000000e+00> : vector<80x128xf32>
    %135 = tpu.matmul %134, %6, %cst_26 {dimension_numbers = #tpu.dot_dimension_numbers<[1], [0], [0], [1], [0, 0, 1, 1], [], []>} : vector<80x32xbf16>, vector<32x128xbf16>, vector<80x128xf32> -> vector<80x128xf32>
    %136 = vector.broadcast %10 : vector<1x128xf32> to vector<80x128xf32>
    %137 = arith.addf %135, %136 : vector<80x128xf32>
    %138 = vector.shape_cast %137 : vector<80x128xf32> to vector<5x16x128xf32>
    %c0_27 = arith.constant 0 : index
    %c0_28 = arith.constant 0 : index
    %c0_29 = arith.constant 0 : index
    %139 = vector.load %arg6[%c0_27, %c0_28, %c0_29] : memref<5x16x128xf32, #tpu.memory_space<vmem>>, vector<5x16x128xf32>
    tpu.vector_store %arg6[%c0_27, %c0_28, %c0_29], %138 {strides = array<i32>} : memref<5x16x128xf32, #tpu.memory_space<vmem>>, vector<5x16x128xf32>,
    return
  }
  func.func @transform_0(%arg0: i32) -> (i32, i32) {
    %c0_i32 = arith.constant 0 : i32
    %c0_i32_0 = arith.constant 0 : i32
    return %arg0, %c0_i32 : i32, i32
  }
  func.func @transform_1(%arg0: i32) -> (i32, i32) {
    %c0_i32 = arith.constant 0 : i32
    %c0_i32_0 = arith.constant 0 : i32
    return %arg0, %c0_i32 : i32, i32
  }
  func.func @transform_2(%arg0: i32) -> (i32, i32) {
    %c0_i32 = arith.constant 0 : i32
    %c0_i32_0 = arith.constant 0 : i32
    return %arg0, %c0_i32 : i32, i32
  }
  func.func @transform_3(%arg0: i32) -> (i32, i32) {
    %c0_i32 = arith.constant 0 : i32
    %c0_i32_0 = arith.constant 0 : i32
    %c0_i32_1 = arith.constant 0 : i32
    return %c0_i32, %c0_i32_0 : i32, i32
  }
  func.func @transform_4(%arg0: i32) -> (i32, i32) {
    %c0_i32 = arith.constant 0 : i32
    %c0_i32_0 = arith.constant 0 : i32
    %c0_i32_1 = arith.constant 0 : i32
    return %c0_i32, %c0_i32_0 : i32, i32
  }
  func.func @transform_5(%arg0: i32) -> (i32, i32, i32) {
    %c0_i32 = arith.constant 0 : i32
    %c0_i32_0 = arith.constant 0 : i32
    %c0_i32_1 = arith.constant 0 : i32
    return %c0_i32, %arg0, %c0_i32_0 : i32, i32, i32
  }
}

</mosaic_0001>

<bundles_post_ra>
// kernel: tpu_custom_call.1
= control target key start
LH: loop header
LB: loop body
LE: loop exit
PB: predicated region body
PF: predicated region fallthrough
CT: control target
= control target key end

     0   :  { %10 = vsyncpa [#allocation3], 0  ;;  %s1481_s0 = inlined_call_operand.vmem [shape: f32[64,8], index: 0, kind: input, shape index: {}]   ;;  %s1482_s1 = inlined_call_operand.vmem [shape: f32[64,8], index: 1, kind: input, shape index: {}]   ;;  %s1483_s2 = inlined_call_operand.vmem [shape: f32[64,16], index: 2, kind: input, shape index: {}]   ;;  %s1484_s3 = inlined_call_operand.vmem [shape: bf16[160,128], index: 3, kind: input, shape index: {}]   ;;  %s1485_s4 = inlined_call_operand.vmem [shape: f32[8,128], index: 4, kind: input, shape index: {}]   ;;  %s1486_s5 = inlined_call_operand.hbm [shape: f32[5,64,128], index: 5, kind: output, shape index: {}]  }
   0x1   :  { %12 = vsyncpa [#allocation3 + $0x1], 0  ;;  %s1218_s18 = smov 0   ;;  %s1220_s19 = smov 0  }
   0x2   :  { %s1222_s20 = smov 0   ;;  %s1224_s21 = smov 0  }
   0x3 LB: > { %s1239_s22 = sadd.s32 4294967295, %s1175_s21   ;;  %s968_s23 = sadd.s32 4294967294, %s1175_s21   ;;  %s1175_s21 = sphi %s1224_s21, %s1492_s21   ;;  %s1171_s20 = sphi %s1222_s20, %s1491_s20   ;;  %s1167_s19 = sphi %s1220_s19, %s1490_s19   ;;  %s1163_s18 = sphi %s1218_s18, %s1489_s18  }
   0x4   : > { %s1243_s24 = sadd.s32 1, %s1175_s21   ;;  %s145_s25 = sadd.s32 1, %s1171_s20 }
   0x5   : > { %s142_s26 = ssub.s32 %s1175_s21, %s1243_s24  ;;  %p155_p0 = scmp.ne.s32.totalorder %s1171_s20, %s1167_s19 }
   0x6   : > { %p143_p1 = scmp.eq.s32.totalorder %s142_s26, 0  ;;  %p156_p2 = scmp.eq.s32.totalorder %s1239_s22, 3 }
   0x7   : > { %p161_p3 = scmp.ne.s32.totalorder %s1167_s19, %s1163_s18  ;;  %p162_p4 = scmp.eq.s32.totalorder %s968_s23, 3 }
   0x8   : > { %s1254_s27 = scalar_select %p143_p1, %s1171_s20, %s145_s25  }
   0x9   : > { %p1256_p5 = por %p156_p2, %p155_p0  ;;  %p1260_p6 = por %p162_p4, %p161_p3 }
   0xa   : > { %p971_p7 = scmp.ge.s32.totalorder %s1175_s21, 1  ;;  %p213_p8 = scmp.lt.s32.totalorder %s1175_s21, 5 }
   0xc   : > { %p214_p9 = pnand %p971_p7, %p213_p8 }
   0xd   : > { %s972_s11 = sshll.u32 (!%p214_p9), %s1239_s22, 1  ;;  %s1179_s26 = smov (!%p214_p9), 64  }
   0xe   : > { %217 = sbr.rel (%p214_p9) target bundleno = 3453 (0xd7d), region = 40  ;;  %p252_p10 = scmp.lt.s32.totalorder (!%p214_p9), %s972_s11, 7 }
   0xf   : > { %s248_s10 = sand.u32 (!%p214_p9), 1, %s1167_s19  }
  0x10   : > { %s844_s13 = scalar_lea.sflag (!%p214_p9), [#allocation3], %s248_s10 }
  0x13   : > { %v272_v0 = vld [vmem:[%s1484_s3 + $0x4] sm:$0xf]  ;;  %vm302_vm0 = vcmask 1043456   ;;  %v271_v1 = vld [vmem:[%s1484_s3] sm:$0xf]  ;;  %v1032_v2 = vld [vmem:[%s1484_s3 + $0x8] sm:$0xff]  ;;  %v439_v46 = vlaneseq }
  0x14   : > { %v304_v3 = vsel %vm302_vm0, %v272_v0, 0  ;;  %v324_v4 = vsel %vm302_vm0, %v271_v1, 0  ;;  %360 = vmatpush.bf16.msra.mxu2 %v1032_v2  ;;  %s1494_s11 = smov (!%p252_p10, %s972_s11), 7  ;;  %vm298_vm1 = vcmask 64512   ;;  %vm349_vm2 = vcmask 130048   ;;  %v1034_v14 = vld [vmem:[%s1484_s3 + $0x18] sm:$0xff] }
  0x15   : > { %313 = vmatpush.bf16.msra.mxu0 %v304_v3  ;;  %333 = vmatpush.bf16.msra.mxu1 %v324_v4  ;;  %s973_s12 = sshll.u32 %s1494_s11, 3  ;;  %v1033_v15 = vld [vmem:[%s1484_s3 + $0x10] sm:$0xff]  ;;  %v1036_v16 = vld [vmem:[%s1484_s3 + $0x28] sm:$0xff]  ;;  %v1297_v21 = vld [vmem:[%s1485_s4] sm:$0xff]  ;;  %vm388_vm3 = vcmask 261120   ;;  %v1177_v37 = vmov 0  }
  0x16   : > { %s261_s15 = scalar_lea.vmem %s1482_s1, %s973_s12  ;;  %s255_s23 = scalar_lea.vmem %s1481_s0, %s973_s12  ;;  %v369_v25 = vperm.slane %v1297_v21, 0  ;;  %v1038_v34 = vld [vmem:[%s1484_s3 + $0x38] sm:$0xff]  ;;  %v1037_v35 = vld [vmem:[%s1484_s3 + $0x30] sm:$0xff]  ;;  %v1035_v36 = vld [vmem:[%s1484_s3 + $0x20] sm:$0xff]  ;;  %v375_v39 = vperm.slane %v1297_v21, 1  ;;  %v440_v47 = vand.u32 127, %v439_v46 }
  0x17   : > { %v295_v5 = vld [vmem:[%s261_s15] sm:$0xff]  ;;  %v296_v6 = vld [vmem:[%s261_s15 + $0x8] sm:$0xff]  ;;  %s267_s30 = scalar_lea.vmem %s1483_s2, %s973_s12  ;;  %v409_v48 = vperm.slane %v1297_v21, 2  ;;  %v1178_v52 = vmov 0.5   ;;  %s1044_s11 = smul.u32 80, %s248_s10 }
  0x18   : > { %v292_v7 = vld [vmem:[%s255_s23] sm:$0xff]  ;;  %v297_v8 = vpack.c.bf16 %v296_v6, %v295_v5  ;;  %v293_v9 = vld [vmem:[%s255_s23 + $0x8] sm:$0xff]  ;;  %532 = vmatpush.bf16.msrb.mxu2 %v1038_v34  ;;  %vm441_vm4 = vcmp.ge.s32.totalorder %v440_v47, 64  ;;  %vm442_vm5 = vcmp.lt.s32.totalorder %v440_v47, 96 }
  0x19   : > { %v340_v10 = vld [vmem:[%s267_s30] sm:$0xff]  ;;  %v341_v11 = vld [vmem:[%s267_s30 + $0x8] sm:$0xff]  ;;  %v294_v12 = vpack.c.bf16 %v293_v9, %v292_v7  ;;  %398 = vmatpush.bf16.msrb.mxu0 %v1034_v14  ;;  %467 = vmatpush.bf16.msrb.mxu1 %v1038_v34  ;;  %vm443_vm6 = vmand %vm441_vm4, %vm442_vm5  ;;  %s1180_s30 = smov 32   ;;  %s1361_s12 = scalar_lea.vmem [#allocation2], %s1044_s11 }
  0x1a   : > { %v342_v13 = vpack.c.bf16 %v341_v11, %v340_v10  ;;  %978 = vmatmul.msk.bf16.vlgmr.msra.gmra.mxu0 %vm298_vm1, %v297_v8  ;;  %v1315_v53 = vsel %vm443_vm6, 1.0, %v1178_v52  ;;  %v1323_v62 = vsel %vm443_vm6, 0.0, %v1178_v52 }
  0x1b   : > { %979 = vmatmul.msk.bf16.vlgmr.msra.gmra.mxu1 %vm298_vm1, %v294_v12 }
  0x1c   : > { %984 = vmatmul.msk.bf16.vlgmr.msra.gmra.mxu2 %vm349_vm2, %v342_v13 }
  0x1d   : > { %399 = vmatpush.bf16.msrb.mxu0 %v1033_v15  ;;  %468 = vmatpush.bf16.msrb.mxu1 %v1037_v35 }
  0x1e   : > { %533 = vmatpush.bf16.msrb.mxu2 %v1037_v35 }
  0x21   : > { %431 = vmatpush.bf16.msra.mxu0 %v1036_v16  ;;  %597 = vmatpush.bf16.msra.mxu1 %v1038_v34 }
  0x25   : > { %432 = vmatpush.bf16.msra.mxu0 %v1035_v36  ;;  %598 = vmatpush.bf16.msra.mxu1 %v1037_v35 }
  0x2b   : > { %469 = vmatmul.bf16.vlgmr.msrb.gmra.mxu1 %v1177_v37 }
  0x2c   : > { %727 = vmatpush.bf16.msrb.mxu1 %v1038_v34 }
  0x30   : > { %728 = vmatpush.bf16.msrb.mxu1 %v1037_v35 }
  0x97   : > { %v315_v17 = vpop.f32.mrf.mxu0 }
  0x98   : > { %v335_v18 = vpop.f32.mrf.mxu1 }
  0x99   : > { %v336_v20 = vadd.f32 %v335_v18, %v315_v17 }
  0x9f   : > { %v362_v19 = vpop.f32.mrf.mxu2  ;;  %v317_v22 = vpop.f32.mrf.mxu0 }
  0xa0   : > { %v337_v23 = vpop.f32.mrf.mxu1  ;;  %v367_v24 = vadd.f32 %v362_v19, %v336_v20 }
  0xa1   : > { %v338_v26 = vadd.f32 %v337_v23, %v317_v22  ;;  %v1040_v22 = vld [vmem:[%s1484_s3 + $0x48] sm:$0xff]  ;;  %v1039_v23 = vld [vmem:[%s1484_s3 + $0x40] sm:$0xff] }
  0xa2   : > { %v370_v28 = vadd.f32 %v369_v25, %v367_v24  ;;  %805 = vmatpush.bf16.msra.mxu2 %v1040_v22  ;;  %1042 = vmatpush.bf16.msra.mxu3 %v1040_v22 }
  0xa4   : > { %v372_v31 = vmax.f32 %v370_v28, 0.0 }
  0xa6   : > { %806 = vmatpush.bf16.msra.mxu2 %v1039_v23  ;;  %1043 = vmatpush.bf16.msra.mxu3 %v1039_v23 }
  0xa7   : > { %v364_v27 = vpop.f32.mrf.mxu2 }
  0xa8   : > { %v368_v29 = vadd.f32 %v364_v27, %v338_v26  ;;  %v470_v49 = vpop.f32.mrf.mxu1 }
  0xaa   : > { %v371_v30 = vadd.f32 %v369_v25, %v368_v29 }
  0xac   : > { %v373_v32 = vmax.f32 %v371_v30, 0.0 }
  0xae   : > { %v374_v33 = vpack.c.bf16 %v373_v32, %v372_v31 }
  0xb0   : > { %993 = vmatmul.msk.bf16.vlgmr.msrb.gmra.mxu0 %vm388_vm3, %v374_v33  ;;  %v472_v58 = vpop.f32.mrf.mxu1  ;;  %v1356_v33 = vperm.slane %v1297_v21, 3 }
  0xb1   : > { %662 = vmatpush.bf16.msrb.mxu0 %v1038_v34 }
  0xb5   : > { %663 = vmatpush.bf16.msrb.mxu0 %v1037_v35 }
 0x12d   : > { %v401_v38 = vpop.f32.mrf.mxu0 }
 0x12e   : > { %v402_v40 = vadd.f32 %v401_v38, %v375_v39 }
 0x130   : > { %v406_v43 = vmax.f32 %v402_v40, 0.0 }
 0x135   : > { %v403_v41 = vpop.f32.mrf.mxu0 }
 0x136   : > { %v404_v42 = vadd.f32 %v403_v41, %v375_v39 }
 0x138   : > { %v407_v44 = vmax.f32 %v404_v42, 0.0 }
 0x13a   : > { %v408_v45 = vpack.c.bf16 %v407_v44, %v406_v43 }
 0x13c   : > { %1002 = vmatmul.msk.bf16.vlgmr.msra.gmra.mxu0 %vm388_vm3, %v408_v45 }
 0x1b9   : > { %v434_v50 = vpop.f32.mrf.mxu0 }
 0x1ba   : > { %v1313_v51 = vadd.f32 %v434_v50, %v409_v48 }
 0x1bc   : > { %v475_v54 = vadd.f32 %v470_v49, %v1313_v51 }
 0x1be   : > { %v477_v55 = vmul.f32 %v475_v54, %v1315_v53 }
 0x1c0   : > { %1101 = vtanh.f32 %v477_v55 }
 0x1c1   : > { %v436_v56 = vpop.f32.mrf.mxu0 }
 0x1c2   : > { %v1319_v57 = vadd.f32 %v436_v56, %v409_v48 }
 0x1c4   : > { %v476_v59 = vadd.f32 %v472_v58, %v1319_v57 }
 0x1c6   : > { %v1102_v60 = vpop.eup %1101  ;;  %v478_v61 = vmul.f32 %v476_v59, %v1315_v53 }
 0x1c7   : > { %v481_v63 = vmul.f32 %v1102_v60, %v1315_v53 }
 0x1c8   : > { %1103 = vtanh.f32 %v478_v61 }
 0x1c9   : > { %v483_v0 = vadd.f32 %v481_v63, %v1323_v62 }
 0x1cb   : > { %489 = vrot.lane.b32.xlu0 %v483_v0, %s1179_s26  ;;  %v485_v8 = vmul.f32 0.0, %v483_v0 }
 0x1ce   : > { %v1104_v1 = vpop.eup %1103 }
 0x1cf   : > { %v482_v2 = vmul.f32 %v1104_v1, %v1315_v53 }
 0x1d1   : > { %v484_v3 = vadd.f32 %v482_v2, %v1323_v62 }
 0x1d3   : > { %491 = vrot.lane.b32.xlu0 %v484_v3, %s1179_s26  ;;  %v486_v11 = vmul.f32 0.0, %v484_v3 }
 0x23d   : > { %v490_v4 = vpop.permute.xlu0 %489 }
 0x23e   : > { %v495_v5 = vmul.f32 %v490_v4, %v483_v0 }
 0x240   : > { %499 = vrot.lane.b32.xlu1 %v495_v5, %s1180_s30 }
 0x245   : > { %v492_v6 = vpop.permute.xlu0 %491 }
 0x246   : > { %v496_v7 = vmul.f32 %v492_v6, %v484_v3 }
 0x248   : > { %501 = vrot.lane.b32.xlu1 %v496_v7, %s1180_s30 }
 0x2b2   : > { %v500_v9 = vpop.permute.xlu1 %499 }
 0x2b3   : > { %v1333_v10 = vadd.f32 %v500_v9, %v485_v8 }
 0x2b5   : > { %1105 = vtanh.f32 %v1333_v10 }
 0x2ba   : > { %v502_v12 = vpop.permute.xlu1 %501 }
 0x2bb   : > { %v1106_v13 = vpop.eup %1105  ;;  %v506_v14 = vadd.f32 %v502_v12, %v486_v11 }
 0x2bc   : > { %511 = vrot.lane.b32.xlu2 %v1106_v13, %s1179_s26 }
 0x2bd   : > { %1107 = vtanh.f32 %v506_v14 }
 0x2c3   : > { %v1108_v15 = vpop.eup %1107 }
 0x2c4   : > { %513 = vrot.lane.b32.xlu2 %v1108_v15, %s1179_s26 }
 0x316   : > { %v512_v16 = vpop.permute.xlu2 %511 }
 0x317   : > { %v517_v18 = vmul.f32 %v512_v16, %v483_v0 }
 0x31e   : > { %v514_v17 = vpop.permute.xlu2 %513 }
 0x31f   : > { %v518_v19 = vmul.f32 %v514_v17, %v484_v3 }
 0x321   : > { %v519_v20 = vpack.c.bf16 %v518_v19, %v517_v18 }
 0x323   : > { %521 = vrot.lane.b32.xlu0 %v519_v20, %s1180_s30 }
 0x395   : > { %v522_v24 = vpop.permute.xlu0 %521 }
 0x396   : > { %1011 = vmatmul.msk.bf16.vlgmr.msrb.gmra.mxu2 %vm388_vm3, %v522_v24 }
 0x3a6   : > { %1023 = vmatmul.msk.bf16.vlgmr.msra.gmra.mxu2 %vm388_vm3, %v522_v24 }
 0x419   : > { %v535_v25 = vpop.f32.mrf.mxu2 }
 0x41a   : > { %v540_v26 = vadd.f32 %v535_v25, %v1313_v51 }
 0x41c   : > { %v542_v27 = vmul.f32 %v540_v26, %v1315_v53 }
 0x41e   : > { %1109 = vtanh.f32 %v542_v27 }
 0x421   : > { %v537_v28 = vpop.f32.mrf.mxu2 }
 0x422   : > { %v541_v29 = vadd.f32 %v537_v28, %v1319_v57 }
 0x424   : > { %v1110_v30 = vpop.eup %1109  ;;  %v543_v31 = vmul.f32 %v541_v29, %v1315_v53 }
 0x425   : > { %v546_v32 = vmul.f32 %v1110_v30, %v1315_v53 }
 0x426   : > { %1111 = vtanh.f32 %v543_v31 }
 0x427   : > { %v548_v34 = vadd.f32 %v546_v32, %v1323_v62 }
 0x429   : > { %554 = vrot.lane.b32.xlu1 %v548_v34, %s1179_s26  ;;  %v808_v35 = vpop.f32.mrf.mxu2  ;;  %v550_v49 = vmul.f32 %v548_v34, %v1333_v10 }
 0x42a   : > { %v809_v36 = vadd.f32 %v808_v35, %v1356_v33 }
 0x42c   : > { %v1112_v37 = vpop.eup %1111  ;;  %833 = vst [vmem:[%s1361_s12] sm:$0xff] %v809_v36 }
 0x42d   : > { %v547_v38 = vmul.f32 %v1112_v37, %v1315_v53 }
 0x42f   : > { %v549_v39 = vadd.f32 %v547_v38, %v1323_v62 }
 0x431   : > { %v810_v21 = vpop.f32.mrf.mxu2  ;;  %556 = vrot.lane.b32.xlu2 %v549_v39, %s1179_s26  ;;  %v551_v45 = vmul.f32 %v549_v39, %v506_v14 }
 0x432   : > { %v811_v40 = vadd.f32 %v810_v21, %v1356_v33 }
 0x434   : > { %834 = vst [vmem:[%s1361_s12 + $0x8] sm:$0xff] %v811_v40 }
 0x48b   : > { %v557_v41 = vpop.permute.xlu2 %556 }
 0x48c   : > { %v561_v42 = vmul.f32 %v557_v41, %v549_v39 }
 0x48e   : > { %566 = vrot.lane.b32.xlu1 %v561_v42, %s1180_s30 }
 0x49b   : > { %v555_v43 = vpop.permute.xlu1 %554 }
 0x49c   : > { %v560_v44 = vmul.f32 %v555_v43, %v548_v34 }
 0x49e   : > { %564 = vrot.lane.b32.xlu0 %v560_v44, %s1180_s30 }
 0x500   : > { %v567_v46 = vpop.permute.xlu1 %566 }
 0x501   : > { %v571_v47 = vadd.f32 %v567_v46, %v551_v45 }
 0x503   : > { %1113 = vtanh.f32 %v571_v47 }
 0x509   : > { %v1114_v48 = vpop.eup %1113 }
 0x50a   : > { %578 = vrot.lane.b32.xlu0 %v1114_v48, %s1179_s26 }
 0x510   : > { %v565_v50 = vpop.permute.xlu0 %564 }
 0x511   : > { %v570_v52 = vadd.f32 %v565_v50, %v550_v49 }
 0x513   : > { %1115 = vtanh.f32 %v570_v52 }
 0x519   : > { %v1116_v54 = vpop.eup %1115 }
 0x51a   : > { %576 = vrot.lane.b32.xlu2 %v1116_v54, %s1179_s26 }
 0x574   : > { %v577_v55 = vpop.permute.xlu2 %576 }
 0x575   : > { %v582_v58 = vmul.f32 %v577_v55, %v548_v34 }
 0x57c   : > { %v579_v56 = vpop.permute.xlu0 %578 }
 0x57d   : > { %v583_v59 = vmul.f32 %v579_v56, %v549_v39 }
 0x57f   : > { %v584_v60 = vpack.c.bf16 %v583_v59, %v582_v58 }
 0x581   : > { %586 = vrot.lane.b32.xlu1 %v584_v60, %s1180_s30 }
 0x5f3   : > { %v587_v61 = vpop.permute.xlu1 %586 }
 0x5f4   : > { %1012 = vmatmul.msk.bf16.vlgmr.msra.gmra.mxu1 %vm388_vm3, %v587_v61  ;;  %1024 = vmatmul.msk.bf16.gmra.mxu2 %vm388_vm3, %v587_v61 }
 0x671   : > { %v600_v63 = vpop.f32.mrf.mxu1 }
 0x672   : > { %v605_v0 = vadd.f32 %v600_v63, %v1313_v51 }
 0x674   : > { %v607_v1 = vmul.f32 %v605_v0, %v1315_v53 }
 0x676   : > { %1117 = vtanh.f32 %v607_v1 }
 0x677   : > { %v813_v2 = vpop.f32.mrf.mxu2 }
 0x678   : > { %v814_v3 = vadd.f32 %v813_v2, %v1356_v33 }
 0x679   : > { %v602_v4 = vpop.f32.mrf.mxu1 }
 0x67a   : > { %835 = vst [vmem:[%s1361_s12 + $0x10] sm:$0xff] %v814_v3  ;;  %v606_v5 = vadd.f32 %v602_v4, %v1319_v57 }
 0x67c   : > { %v1118_v6 = vpop.eup %1117  ;;  %v608_v7 = vmul.f32 %v606_v5, %v1315_v53 }
 0x67d   : > { %v611_v8 = vmul.f32 %v1118_v6, %v1315_v53 }
 0x67e   : > { %1119 = vtanh.f32 %v608_v7 }
 0x67f   : > { %v815_v9 = vpop.f32.mrf.mxu2  ;;  %v613_v10 = vadd.f32 %v611_v8, %v1323_v62 }
 0x680   : > { %v816_v11 = vadd.f32 %v815_v9, %v1356_v33 }
 0x681   : > { %619 = vrot.lane.b32.xlu2 %v613_v10, %s1179_s26  ;;  %v615_v19 = vmul.f32 %v613_v10, %v570_v52 }
 0x682   : > { %836 = vst [vmem:[%s1361_s12 + $0x18] sm:$0xff] %v816_v11 }
 0x684   : > { %v1120_v12 = vpop.eup %1119 }
 0x685   : > { %v612_v13 = vmul.f32 %v1120_v12, %v1315_v53 }
 0x687   : > { %v614_v14 = vadd.f32 %v612_v13, %v1323_v62 }
 0x689   : > { %621 = vrot.lane.b32.xlu0 %v614_v14, %s1179_s26  ;;  %v616_v23 = vmul.f32 %v614_v14, %v571_v47 }
 0x6db   : > { %v620_v15 = vpop.permute.xlu2 %619 }
 0x6dc   : > { %v625_v16 = vmul.f32 %v620_v15, %v613_v10 }
 0x6de   : > { %629 = vrot.lane.b32.xlu1 %v625_v16, %s1180_s30 }
 0x6fb   : > { %v622_v17 = vpop.permute.xlu0 %621 }
 0x6fc   : > { %v626_v18 = vmul.f32 %v622_v17, %v614_v14 }
 0x6fe   : > { %631 = vrot.lane.b32.xlu2 %v626_v18, %s1180_s30 }
 0x750   : > { %v630_v20 = vpop.permute.xlu1 %629 }
 0x751   : > { %v635_v22 = vadd.f32 %v630_v20, %v615_v19 }
 0x753   : > { %1121 = vtanh.f32 %v635_v22 }
 0x758   : > { %v632_v24 = vpop.permute.xlu2 %631 }
 0x759   : > { %v1122_v25 = vpop.eup %1121  ;;  %v636_v26 = vadd.f32 %v632_v24, %v616_v23 }
 0x75a   : > { %641 = vrot.lane.b32.xlu0 %v1122_v25, %s1179_s26 }
 0x75b   : > { %1123 = vtanh.f32 %v636_v26 }
 0x761   : > { %v1124_v27 = vpop.eup %1123 }
 0x762   : > { %643 = vrot.lane.b32.xlu1 %v1124_v27, %s1179_s26 }
 0x7cc   : > { %v642_v28 = vpop.permute.xlu0 %641 }
 0x7cd   : > { %v647_v30 = vmul.f32 %v642_v28, %v613_v10 }
 0x7d4   : > { %v644_v29 = vpop.permute.xlu1 %643 }
 0x7d5   : > { %v648_v31 = vmul.f32 %v644_v29, %v614_v14 }
 0x7d7   : > { %v649_v32 = vpack.c.bf16 %v648_v31, %v647_v30 }
 0x7d9   : > { %651 = vrot.lane.b32.xlu2 %v649_v32, %s1180_s30 }
 0x833   : > { %v652_v34 = vpop.permute.xlu2 %651 }
 0x834   : > { %1013 = vmatmul.msk.bf16.vlgmr.msrb.gmra.mxu0 %vm388_vm3, %v652_v34  ;;  %1025 = vmatmul.msk.bf16.vlgmr.msra.gmra.mxu3 %vm388_vm3, %v652_v34 }
 0x8b1   : > { %v665_v35 = vpop.f32.mrf.mxu0 }
 0x8b2   : > { %v670_v36 = vadd.f32 %v665_v35, %v1313_v51 }
 0x8b4   : > { %v672_v37 = vmul.f32 %v670_v36, %v1315_v53 }
 0x8b6   : > { %1125 = vtanh.f32 %v672_v37 }
 0x8b7   : > { %v818_v38 = vpop.f32.mrf.mxu3 }
 0x8b8   : > { %v819_v39 = vadd.f32 %v818_v38, %v1356_v33 }
 0x8b9   : > { %v667_v21 = vpop.f32.mrf.mxu0 }
 0x8ba   : > { %837 = vst [vmem:[%s1361_s12 + $0x20] sm:$0xff] %v819_v39  ;;  %v671_v40 = vadd.f32 %v667_v21, %v1319_v57 }
 0x8bc   : > { %v1126_v41 = vpop.eup %1125  ;;  %v673_v42 = vmul.f32 %v671_v40, %v1315_v53 }
 0x8bd   : > { %v676_v43 = vmul.f32 %v1126_v41, %v1315_v53 }
 0x8be   : > { %1127 = vtanh.f32 %v673_v42 }
 0x8bf   : > { %v820_v44 = vpop.f32.mrf.mxu3  ;;  %v678_v45 = vadd.f32 %v676_v43, %v1323_v62 }
 0x8c0   : > { %v821_v46 = vadd.f32 %v820_v44, %v1356_v33 }
 0x8c1   : > { %684 = vrot.lane.b32.xlu0 %v678_v45, %s1179_s26  ;;  %v680_v56 = vmul.f32 %v678_v45, %v635_v22 }
 0x8c2   : > { %838 = vst [vmem:[%s1361_s12 + $0x28] sm:$0xff] %v821_v46 }
 0x8c4   : > { %v1128_v47 = vpop.eup %1127 }
 0x8c5   : > { %v677_v48 = vmul.f32 %v1128_v47, %v1315_v53 }
 0x8c7   : > { %v679_v49 = vadd.f32 %v677_v48, %v1323_v62 }
 0x8c9   : > { %686 = vrot.lane.b32.xlu1 %v679_v49, %s1179_s26  ;;  %v681_v61 = vmul.f32 %v679_v49, %v636_v26 }
 0x933   : > { %v685_v50 = vpop.permute.xlu0 %684 }
 0x934   : > { %v690_v52 = vmul.f32 %v685_v50, %v678_v45 }
 0x936   : > { %694 = vrot.lane.b32.xlu2 %v690_v52, %s1180_s30 }
 0x93b   : > { %v687_v54 = vpop.permute.xlu1 %686 }
 0x93c   : > { %v691_v55 = vmul.f32 %v687_v54, %v679_v49 }
 0x93e   : > { %696 = vrot.lane.b32.xlu0 %v691_v55, %s1180_s30 }
 0x990   : > { %v695_v58 = vpop.permute.xlu2 %694 }
 0x991   : > { %v700_v59 = vadd.f32 %v695_v58, %v680_v56 }
 0x993   : > { %1129 = vtanh.f32 %v700_v59 }
 0x999   : > { %v1130_v60 = vpop.eup %1129 }
 0x99a   : > { %706 = vrot.lane.b32.xlu1 %v1130_v60, %s1179_s26 }
 0x9b0   : > { %v697_v63 = vpop.permute.xlu0 %696 }
 0x9b1   : > { %v701_v0 = vadd.f32 %v697_v63, %v681_v61 }
 0x9b3   : > { %1131 = vtanh.f32 %v701_v0 }
 0x9b9   : > { %v1132_v1 = vpop.eup %1131 }
 0x9ba   : > { %708 = vrot.lane.b32.xlu2 %v1132_v1, %s1179_s26 }
 0xa0c   : > { %v707_v2 = vpop.permute.xlu1 %706 }
 0xa0d   : > { %v712_v4 = vmul.f32 %v707_v2, %v678_v45 }
 0xa14   : > { %v709_v3 = vpop.permute.xlu2 %708 }
 0xa15   : > { %v713_v5 = vmul.f32 %v709_v3, %v679_v49 }
 0xa17   : > { %v714_v6 = vpack.c.bf16 %v713_v5, %v712_v4 }
 0xa19   : > { %716 = vrot.lane.b32.xlu0 %v714_v6, %s1180_s30 }
 0xa8b   : > { %v717_v7 = vpop.permute.xlu0 %716 }
 0xa8c   : > { %1014 = vmatmul.msk.bf16.vlgmr.msrb.gmra.mxu1 %vm388_vm3, %v717_v7  ;;  %1026 = vmatmul.msk.bf16.gmra.mxu3 %vm388_vm3, %v717_v7 }
 0xb09   : > { %v730_v8 = vpop.f32.mrf.mxu1 }
 0xb0a   : > { %v735_v9 = vadd.f32 %v730_v8, %v1313_v51 }
 0xb0c   : > { %v737_v10 = vmul.f32 %v735_v9, %v1315_v53 }
 0xb0e   : > { %1133 = vtanh.f32 %v737_v10 }
 0xb0f   : > { %v823_v11 = vpop.f32.mrf.mxu3 }
 0xb10   : > { %v824_v12 = vadd.f32 %v823_v11, %v1356_v33 }
 0xb11   : > { %v732_v13 = vpop.f32.mrf.mxu1 }
 0xb12   : > { %839 = vst [vmem:[%s1361_s12 + $0x30] sm:$0xff] %v824_v12  ;;  %v736_v14 = vadd.f32 %v732_v13, %v1319_v57 }
 0xb14   : > { %v1134_v15 = vpop.eup %1133  ;;  %v738_v16 = vmul.f32 %v736_v14, %v1315_v53 }
 0xb15   : > { %v741_v17 = vmul.f32 %v1134_v15, %v1315_v53 }
 0xb16   : > { %1135 = vtanh.f32 %v738_v16 }
 0xb17   : > { %v825_v18 = vpop.f32.mrf.mxu3  ;;  %v743_v51 = vadd.f32 %v741_v17, %v1323_v62 }
 0xb18   : > { %v826_v19 = vadd.f32 %v825_v18, %v1356_v33 }
 0xb19   : > { %749 = vrot.lane.b32.xlu1 %v743_v51, %s1179_s26 }
 0xb1a   : > { %840 = vst [vmem:[%s1361_s12 + $0x38] sm:$0xff] %v826_v19 }
 0xb1c   : > { %v1136_v20 = vpop.eup %1135 }
 0xb1d   : > { %v742_v22 = vmul.f32 %v1136_v20, %v1315_v53  ;;  %v745_v53 = vmul.f32 %v743_v51, %v700_v59 }
 0xb1f   : > { %v744_v23 = vadd.f32 %v742_v22, %v1323_v62 }
 0xb21   : > { %751 = vrot.lane.b32.xlu2 %v744_v23, %s1179_s26  ;;  %v746_v27 = vmul.f32 %v744_v23, %v701_v0 }
 0xb7b   : > { %v752_v57 = vpop.permute.xlu2 %751 }
 0xb7c   : > { %v756_v24 = vmul.f32 %v752_v57, %v744_v23 }
 0xb7e   : > { %761 = vrot.lane.b32.xlu1 %v756_v24, %s1180_s30 }
 0xb8b   : > { %v750_v25 = vpop.permute.xlu1 %749 }
 0xb8c   : > { %v755_v26 = vmul.f32 %v750_v25, %v743_v51 }
 0xb8e   : > { %759 = vrot.lane.b32.xlu0 %v755_v26, %s1180_s30 }
 0xbf0   : > { %v762_v28 = vpop.permute.xlu1 %761 }
 0xbf1   : > { %v766_v29 = vadd.f32 %v762_v28, %v746_v27 }
 0xbf3   : > { %1137 = vtanh.f32 %v766_v29 }
 0xbf9   : > { %v1138_v30 = vpop.eup %1137 }
 0xbfa   : > { %773 = vrot.lane.b32.xlu0 %v1138_v30, %s1179_s26 }
 0xc00   : > { %v760_v62 = vpop.permute.xlu0 %759 }
 0xc01   : > { %v765_v31 = vadd.f32 %v760_v62, %v745_v53 }
 0xc03   : > { %1139 = vtanh.f32 %v765_v31 }
 0xc09   : > { %v1140_v32 = vpop.eup %1139 }
 0xc0a   : > { %771 = vrot.lane.b32.xlu2 %v1140_v32, %s1179_s26 }
 0xc64   : > { %v772_v34 = vpop.permute.xlu2 %771 }
 0xc65   : > { %v777_v36 = vmul.f32 %v772_v34, %v743_v51 }
 0xc6c   : > { %v774_v35 = vpop.permute.xlu0 %773 }
 0xc6d   : > { %v778_v37 = vmul.f32 %v774_v35, %v744_v23 }
 0xc6f   : > { %v779_v38 = vpack.c.bf16 %v778_v37, %v777_v36 }
 0xc71   : > { %782 = vrot.lane.b32.xlu1 %v779_v38, %s1180_s30 }
 0xce3   : > { %v783_v39 = vpop.permute.xlu1 %782 }
 0xce4   : > { %1027 = vmatmul.msk.bf16.gmra.mxu3 %vm388_vm3, %v783_v39 }
 0xd67   : > { %v828_v21 = vpop.f32.mrf.mxu3 }
 0xd68   : > { %v829_v40 = vadd.f32 %v828_v21, %v1356_v33 }
 0xd6a   : > { %841 = vst [vmem:[%s1361_s12 + $0x40] sm:$0xff] %v829_v40 }
 0xd6f   : > { %v830_v41 = vpop.f32.mrf.mxu3 }
 0xd70   : > { %v831_v42 = vadd.f32 %v830_v41, %v1356_v33 }
 0xd72   : > { %842 = vst [vmem:[%s1361_s12 + $0x48] sm:$0xff] %v831_v42 }
 0xd73   : > { %s1041_s14 = sshll.u32 %s1239_s22, 4  ;;  %s866_s15 = sshll.u32 %s1361_s12, 4  ;;  %s867_s15 = int_to_ptr.vmem [resolvable:$true] %s866_s15 }
 0xd74   : > { %s855_s23 = scalar_lea.hbm %s1486_s5, %s1041_s14  ;;  %s1181_s26 = smov 256  }
 0xd75   : > { %s868_s25 = sshll.u32 %s855_s23, 4  ;;  %1045 = sst [smem:[#allocation5]] (%p1256_p5), %s1181_s26  ;;  %s869_s25 = int_to_ptr.hbm [resolvable:$true] %s868_s25 }
 0xd76   : > { %s1182_s30 = smov 1024   ;;  %s1183_s6 = smov 2  }
 0xd77   : > { %1046 = sst [smem:[#allocation5 + $0x1]] (%p1256_p5), %s1182_s30  ;;  %s1184_s22 = smov 128  }
 0xd78   : > { %1047 = sst [smem:[#allocation5 + $0x2]] (%p1256_p5), %s1183_s6  ;;  %s1185_s7 = smov 8  }
 0xd79   : > { %1048 = sst [smem:[#allocation5 + $0x3]] (%p1256_p5), %s1184_s22  ;;  %s1186_s8 = smov [#allocation4]  }
 0xd7a   : > { %1049 = sst [smem:[#allocation5 + $0x4]] (%p1256_p5), %s1184_s22  ;;  %s1187_s9 = smov 0  }
 0xd7b   : > { %1050 = sst [smem:[#allocation5 + $0x5]] (%p1256_p5), %s1185_s7 }
 0xd7c   : > { %1051 = dma.general (%p1256_p5), %s867_s15, 1280, %s869_s25, %s844_s13, %s1186_s8, [#allocation5], %s1187_s9, 0  }
 0xd7d PF: > { %p1057_p11 = scmp.ge.s32.totalorder %s1175_s21, 2  ;;  %s896_s10 = sand.u32 1, %s1163_s18  }
 0xd7e   : > { %s897_s11 = scalar_lea.sflag [#allocation3], %s896_s10 }
 0xd7f   : > { %p1054_p12 = pnand %p1057_p11, %p1260_p6 }
 0xd81   : > { %p1055_p13 = pneg %p1054_p12 }
 0xd83   : > { %1158 = dma.done.wait (%p1055_p13), %s897_s11, 1280  }
 0xd84   : > { %1160 = vsyncadd (%p1055_p13), %s897_s11, 4294966016  ;;  %p15_p0 = scmp.ge.s32.totalorder %s1243_s24, 6   ;;  %s1489_s18 = smov %s1167_s19 }
 0xd85   : > { %s1490_s19 = smov %s1171_s20  ;;  %s1491_s20 = smov %s1254_s27 }
 0xd86   : > { %s1492_s21 = smov %s1243_s24  ;;  %17 = sbr.rel (!%p15_p0) target bundleno = 3 (0x3), region = 86 }
 0xd8b   :  { %903 = vsyncpa [#allocation3], 1 }
 0xd8c   :  { %905 = vsyncpa [#allocation3 + $0x1], 1 }

</bundles_post_ra>
